<compile_context>
chip_gen: v7x
topology: tpu7x:2x2x1
jax: 0.10.0
libtpu: 0.0.40
codegen_flags: <defaults>
</compile_context>

<pallas_src>
import math
import functools

import numpy as np
import jax
import jax.numpy as jnp
from jax.experimental import pallas as pl
from jax.experimental.pallas import tpu as pltpu


PATCH = 8


# ------------------------------- kernel -------------------------------------

def dct_kernel(kron_ref, x_ref, o_ref, *, n_sub, kr):
    """o = kron(I, D2) @ x, applied per kr-row sub-chunk of the tile.

    kron_ref: (kr, kr) block-diagonal constant kron(I_{kr/8}, D @ D), resident.
    x_ref / o_ref: (r_tile, W) row tile;  r_tile == n_sub * kr.
    """
    k = kron_ref[...]
    for s in range(n_sub):                      # static unroll, n_sub <= 32
        lo, hi = s * kr, (s + 1) * kr
        o_ref[lo:hi, :] = jnp.dot(k, x_ref[lo:hi, :],
                                  preferred_element_type=jnp.float32)


# ------------------------------ helpers --------------------------------------

def _make_dct_basis_np(p=PATCH):
    b = np.zeros((p, p), dtype=np.float64)
    for u in range(p):
        cu = 1.0 / math.sqrt(p) if u == 0 else math.sqrt(2.0 / p)
        for x in range(p):
            b[u, x] = cu * math.cos((2 * x + 1) * u * math.pi / (2 * p))
    return b.astype(np.float32)


def _choose_tiling(rows, w):
    """Pick (kr, r_tile, n_sub): kron size, row-tile size, sub-chunks per tile."""
    if rows <= 128:
        return rows, rows, 1                     # single block, kron = (rows, rows)
    kr = 128                                     # 128-wide MXU contraction, 64 KiB kron
    # Target ~2 MiB per tile buffer so 2x(in)+2x(out) double buffers + kron fit
    # comfortably inside even v5e's 16 MiB default scoped VMEM.
    cap_by_vmem = max(kr, ((2 * 1024 * 1024 // (4 * w)) // kr) * kr)
    r_tile = min(4096, cap_by_vmem, (rows // kr) * kr)
    return kr, r_tile, r_tile // kr


# ------------------------------ wrapper --------------------------------------

@functools.partial(jax.jit, static_argnames=("patch",))
def dct_layer_forward(x, patch=PATCH):
    """Faithful port of DCTLayer.forward."""
    B, C, H, W = x.shape
    if H % patch != 0 or W % patch != 0:
        # Mirrors F.pad(x, (0, p - W % p, 0, p - H % p)) exactly, including the
        # full-patch pad when only one of the two dims is misaligned.
        x = jnp.pad(x, ((0, 0), (0, 0),
                        (0, patch - H % patch), (0, patch - W % patch)))
        B, C, H, W = x.shape
    nh, nw = H // patch, W // patch
    rows = B * C * H                              # always a multiple of 8

    # Free contiguous reshape -- no input-side transpose / HBM pass.
    x2 = x.reshape(rows, W).astype(jnp.float32)

    kr, r_tile, n_sub = _choose_tiling(rows, W)
    r_g = kr // patch

    d = _make_dct_basis_np(patch)
    d2 = (d @ d).astype(np.float32)
    kron = jnp.asarray(np.kron(np.eye(r_g, dtype=np.float32), d2))  # (kr, kr)

    grid = (pl.cdiv(rows, r_tile),)
    kernel = functools.partial(dct_kernel, n_sub=n_sub, kr=kr)

    cost = pl.CostEstimate(
        flops=2 * kr * rows * W,                  # block-diag matmul as executed
        transcendentals=0,
        bytes_accessed=4 * (2 * rows * W + kr * kr),
    )

    z2 = pl.pallas_call(
        kernel,
        out_shape=jax.ShapeDtypeStruct((rows, W), jnp.float32),
        grid=grid,
        in_specs=[
            pl.BlockSpec((kr, kr), lambda i: (0, 0)),     # constant -> resident
            pl.BlockSpec((r_tile, W), lambda i: (i, 0)),
        ],
        out_specs=pl.BlockSpec((r_tile, W), lambda i: (i, 0)),
        compiler_params=pltpu.CompilerParams(
            dimension_semantics=("parallel",)),
        cost_estimate=cost,
    )(kron, x2)

    # z2[bc*H + ph*8 + v, pw*8 + j] = (D2 @ X_patch)[v, j]
    # out[b, c, ph*8 + j, pw*8 + v] = z2[...]  -> single wrapper transpose.
    z6 = z2.reshape(B, C, nh, patch, nw, patch)          # [b, c, ph, v, pw, j]
    out = jnp.transpose(z6, (0, 1, 2, 5, 4, 3))          # [b, c, ph, j, pw, v]
    return out.reshape(B, C, H, W)


# ------------------------- pure-JAX reference check --------------------------

def _dct_layer_reference(x, d, patch=PATCH):
    B, C, H, W = x.shape
    nh, nw = H // patch, W // patch
    xp = x.reshape(B, C, nh, patch, nw, patch).transpose(0, 1, 2, 4, 3, 5)
    xp = xp.reshape(B, C, nh * nw, patch, patch)                 # (b,c,n,i,j)
    dct1 = jnp.einsum("ui,bcnij->bcnuj", d, xp)                  # D @ X
    dct2 = jnp.einsum("bcnuj,vu->bcnjv", dct1, d)                # X1^T @ D^T
    dct2 = dct2.reshape(B, C, nh, nw, patch, patch).transpose(0, 1, 2, 4, 3, 5)
    return dct2.reshape(B, C, H, W)


# --------------------------------- main ---------------------------------------

if __name__ == "__main__":
    B, C, H, W = 2, 4, 16, 16
    key = jax.random.PRNGKey(0)
    x = jax.random.normal(key, (B, C, H, W), jnp.float32)

    out = jax.block_until_ready(dct_layer_forward(x))
    assert out.shape == (B, C, H, W)
    assert bool(jnp.all(jnp.isfinite(out)))

    ref = _dct_layer_reference(x, jnp.asarray(_make_dct_basis_np(PATCH)))
    max_err = float(jnp.max(jnp.abs(out - ref)))
    assert max_err < 1e-4, f"max abs err vs reference: {max_err}"

    print("KERNEL_OK")
</pallas_src>

<mosaic_0001>
module attributes {stable_mosaic.version = 11 : i64} {
  func.func @dct_kernel(%arg0: i32, %arg1: memref<128x128xf32, #tpu.memory_space<vmem>>, %arg2: memref<128x16xf32, #tpu.memory_space<vmem>>, %arg3: memref<128x16xf32, #tpu.memory_space<vmem>>) attributes {dimension_semantics = [#tpu.dimension_semantics<parallel>], iteration_bounds = array<i64: 1>, scalar_prefetch = 0 : i64, scratch_operands = 0 : i64, tpu.core_type = #tpu.core_type<tc>, window_params = [{pipeline_mode = #tpu.pipeline_mode<synchronous>, transform_indices = @transform_0, window_bounds = array<i64: 128, 128>}, {transform_indices = @transform_1, window_bounds = array<i64: 128, 16>}, {transform_indices = @transform_2, window_bounds = array<i64: 128, 16>}]} {
    %c0 = arith.constant 0 : index
    %c0_0 = arith.constant 0 : index
    %0 = vector.load %arg1[%c0, %c0_0] : memref<128x128xf32, #tpu.memory_space<vmem>>, vector<128x128xf32>
    %c0_1 = arith.constant 0 : index
    %c0_2 = arith.constant 0 : index
    %1 = vector.load %arg2[%c0_1, %c0_2] : memref<128x16xf32, #tpu.memory_space<vmem>>, vector<128x16xf32>
    %cst = arith.constant dense<0.000000e+00> : vector<128x16xf32>
    %2 = tpu.matmul %0, %1, %cst {dimension_numbers = #tpu.dot_dimension_numbers<[1], [0], [0], [1], [0, 0, 1, 1], [], []>} : vector<128x128xf32>, vector<128x16xf32>, vector<128x16xf32> -> vector<128x16xf32>
    %c0_3 = arith.constant 0 : index
    %c0_4 = arith.constant 0 : index
    %3 = vector.load %arg3[%c0_3, %c0_4] : memref<128x16xf32, #tpu.memory_space<vmem>>, vector<128x16xf32>
    tpu.vector_store %arg3[%c0_3, %c0_4], %2 {strides = array<i32>} : memref<128x16xf32, #tpu.memory_space<vmem>>, vector<128x16xf32>,
    return
  }
  func.func @transform_0(%arg0: i32) -> (i32, i32) {
    %c0_i32 = arith.constant 0 : i32
    %c0_i32_0 = arith.constant 0 : i32
    %c0_i32_1 = arith.constant 0 : i32
    return %c0_i32, %c0_i32_0 : i32, i32
  }
  func.func @transform_1(%arg0: i32) -> (i32, i32) {
    %c0_i32 = arith.constant 0 : i32
    %c0_i32_0 = arith.constant 0 : i32
    return %arg0, %c0_i32 : i32, i32
  }
  func.func @transform_2(%arg0: i32) -> (i32, i32) {
    %c0_i32 = arith.constant 0 : i32
    %c0_i32_0 = arith.constant 0 : i32
    return %arg0, %c0_i32 : i32, i32
  }
}

</mosaic_0001>

<bundles_post_ra>
// kernel: dct_layer_forward.1
= control target key start
LH: loop header
LB: loop body
LE: loop exit
PB: predicated region body
PF: predicated region fallthrough
CT: control target
= control target key end

     0   :  { %7 = vsyncpa [#allocation3], 0  ;;  %s534_s0 = inlined_call_operand.hbm [shape: f32[128,128], index: 0, kind: input, shape index: {}]   ;;  %s535_s1 = inlined_call_operand.hbm [shape: f32[128,16], index: 1, kind: input, shape index: {}]   ;;  %s536_s2 = inlined_call_operand.vmem [shape: f32[128,16], index: 2, kind: output, shape index: {}]  }
   0x1   :  { %8 = vsyncpa [#allocation5], 0  ;;  %s427_s9 = smov [#allocation2]   ;;  %s379_s13 = scalar_lea.hbm %s534_s0, 2048 }
   0x2   :  { %s14_s10 = sshll.u32 %s427_s9, 4  ;;  %p380_p0 = scmp.ne.s32.totalorder %s534_s0, %s379_s13  ;;  %s15_s10 = int_to_ptr.vmem [resolvable:$true] %s14_s10 }
   0x3   :  { %p383_p1 = scmp.lt.u32.totalorder %s379_s13, %s534_s0 }
   0x5   :  { %p385_p2 = pnand %p383_p1, %p380_p0 }
   0x7   :  { %388 = shalt.err (!%p385_p2)
}
   0x8   :  { %s389_s18 = scalar_lea.vmem %s15_s10, 2048  ;;  %p394_p4 = scmp.lt.s32.totalorder %s15_s10, %s15_s10 }
   0x9   :  { %p390_p3 = scmp.ne.s32.totalorder %s15_s10, %s389_s18  ;;  %p395_p5 = scmp.lt.s32.totalorder %s389_s18, %s389_s18 }
   0xb   :  { %p396_p6 = por %p395_p5, %p394_p4 }
   0xd   :  { %p397_p7 = pnand %p396_p6, %p390_p3 }
   0xf   :  { %400 = shalt.err (!%p397_p7)
}
  0x10   :  { %s428_s19 = smov 128   ;;  %s429_s20 = smov 8  }
  0x11   :  { %20 = dma.hbm_to_vmem [thread:$0]  %s534_s0, 2048, %s15_s10, [#allocation3], %s428_s19, %s428_s19, %s429_s20  }
  0x12   :  { %s430_s23 = smov [#allocation4]   ;;  %s401_s27 = scalar_lea.hbm %s535_s1, 2048 }
  0x13   :  { %s26_s24 = sshll.u32 %s430_s23, 4  ;;  %p402_p8 = scmp.ne.s32.totalorder %s535_s1, %s401_s27  ;;  %s27_s24 = int_to_ptr.vmem [resolvable:$true] %s26_s24 }
  0x14   :  { %p405_p9 = scmp.lt.u32.totalorder %s401_s27, %s535_s1 }
  0x16   :  { %p407_p10 = pnand %p405_p9, %p402_p8 }
  0x18   :  { %410 = shalt.err (!%p407_p10)
}
  0x19   :  { %s411_s4 = scalar_lea.vmem %s27_s24, 2048  ;;  %p416_p12 = scmp.lt.s32.totalorder %s27_s24, %s27_s24 }
  0x1a   :  { %p412_p11 = scmp.ne.s32.totalorder %s27_s24, %s411_s4  ;;  %p417_p13 = scmp.lt.s32.totalorder %s411_s4, %s411_s4 }
  0x1c   :  { %p418_p0 = por %p417_p13, %p416_p12 }
  0x1e   :  { %p419_p1 = pnand %p418_p0, %p412_p11 }
  0x20   :  { %422 = shalt.err (!%p419_p1)
}
  0x21   :  { %32 = dma.hbm_to_vmem [thread:$0]  %s535_s1, 2048, %s27_s24, [#allocation5], %s428_s19, %s428_s19, %s429_s20  }
  0x22   :  { %423 = dma.done.wait [#allocation3], 2048  }
  0x23   :  { %424 = vsyncadd [#allocation3], 4294965248 }
  0x24   :  { %425 = dma.done.wait [#allocation5], 2048  }
  0x25   :  { %426 = vsyncadd [#allocation5], 4294965248  ;;  %v55_v0 = vld [vmem:[#allocation4] sm:$0xff]  ;;  %v56_v1 = vld [vmem:[#allocation4 + $0x8] sm:$0xff]  ;;  %vm216_vm0 = vcmask 130048  }
  0x26   :  { %v57_v2 = vld [vmem:[#allocation4 + $0x10] sm:$0xff]  ;;  %v327_v3 = vpack.c.bf16 %v56_v1, %v55_v0  ;;  %v58_v4 = vld [vmem:[#allocation4 + $0x18] sm:$0xff]  ;;  %v59_v6 = vld [vmem:[#allocation4 + $0x20] sm:$0xff] }
  0x27   :  { %v331_v5 = vpack.c.bf16 %v58_v4, %v57_v2  ;;  %v60_v7 = vld [vmem:[#allocation4 + $0x28] sm:$0xff]  ;;  %v39_v9 = vld [vmem:[#allocation2] sm:$0xff]  ;;  %v61_v11 = vld [vmem:[#allocation4 + $0x30] sm:$0xff] }
  0x28   :  { %328 = vmatprep.subr.bf16.mxu0 %v327_v3  ;;  %359 = vmatprep.subr.bf16.mxu1 %v327_v3  ;;  %v335_v8 = vpack.c.bf16 %v60_v7, %v59_v6  ;;  %v47_v10 = vld [vmem:[#allocation2 + $0x40] sm:$0xff]  ;;  %v62_v12 = vld [vmem:[#allocation4 + $0x38] sm:$0xff]  ;;  %v64_v15 = vld [vmem:[#allocation4 + $0x48] sm:$0xff] }
  0x29   :  { %330 = vmatpush3.bf16.msra.mxu0 %v327_v3  ;;  %367 = vmatpush3.bf16.msra.mxu1 %v327_v3  ;;  %v339_v13 = vpack.c.bf16 %v62_v12, %v61_v11  ;;  %v63_v14 = vld [vmem:[#allocation4 + $0x40] sm:$0xff]  ;;  %v65_v17 = vld [vmem:[#allocation4 + $0x50] sm:$0xff]  ;;  %v66_v18 = vld [vmem:[#allocation4 + $0x58] sm:$0xff] }
  0x2a   :  { %332 = vmatprep.subr.bf16.mxu0 %v331_v5  ;;  %360 = vmatprep.subr.bf16.mxu1 %v331_v5  ;;  %v343_v16 = vpack.c.bf16 %v64_v15, %v63_v14  ;;  %v347_v19 = vpack.c.bf16 %v66_v18, %v65_v17  ;;  %v67_v20 = vld [vmem:[#allocation4 + $0x60] sm:$0xff]  ;;  %v68_v21 = vld [vmem:[#allocation4 + $0x68] sm:$0xff]  ;;  %v69_v23 = vld [vmem:[#allocation4 + $0x70] sm:$0xff] }
  0x2b   :  { %303 = vmatprep.mubr.f32.mxu0 %v39_v9  ;;  %315 = vmatprep.mubr.f32.mxu1 %v47_v10  ;;  %v351_v22 = vpack.c.bf16 %v68_v21, %v67_v20  ;;  %v70_v24 = vld [vmem:[#allocation4 + $0x78] sm:$0xff]  ;;  %v40_v26 = vld [vmem:[#allocation2 + $0x8] sm:$0xff]  ;;  %v41_v28 = vld [vmem:[#allocation2 + $0x10] sm:$0xff] }
  0x2c   :  { %v355_v25 = vpack.c.bf16 %v70_v24, %v69_v23  ;;  %v48_v27 = vld [vmem:[#allocation2 + $0x48] sm:$0xff]  ;;  %v49_v29 = vld [vmem:[#allocation2 + $0x50] sm:$0xff]  ;;  %v42_v30 = vld [vmem:[#allocation2 + $0x18] sm:$0xff] }
  0x2d   :  { %334 = vmatpush3.bf16.msra.mxu0 %v331_v5  ;;  %368 = vmatpush3.bf16.msra.mxu1 %v331_v5  ;;  %v50_v31 = vld [vmem:[#allocation2 + $0x58] sm:$0xff]  ;;  %v43_v32 = vld [vmem:[#allocation2 + $0x20] sm:$0xff]  ;;  %v44_v34 = vld [vmem:[#allocation2 + $0x28] sm:$0xff] }
  0x2e   :  { %336 = vmatprep.subr.bf16.mxu0 %v335_v8  ;;  %361 = vmatprep.subr.bf16.mxu1 %v335_v8  ;;  %v51_v33 = vld [vmem:[#allocation2 + $0x60] sm:$0xff]  ;;  %v52_v35 = vld [vmem:[#allocation2 + $0x68] sm:$0xff]  ;;  %v45_v36 = vld [vmem:[#allocation2 + $0x30] sm:$0xff] }
  0x2f   :  { %v53_v37 = vld [vmem:[#allocation2 + $0x70] sm:$0xff]  ;;  %v46_v38 = vld [vmem:[#allocation2 + $0x38] sm:$0xff] }
  0x30   :  { %v54_v39 = vld [vmem:[#allocation2 + $0x78] sm:$0xff] }
  0x31   :  { %338 = vmatpush3.bf16.msra.mxu0 %v335_v8  ;;  %369 = vmatpush3.bf16.msra.mxu1 %v335_v8 }
  0x32   :  { %340 = vmatprep.subr.bf16.mxu0 %v339_v13  ;;  %362 = vmatprep.subr.bf16.mxu1 %v339_v13 }
  0x35   :  { %342 = vmatpush3.bf16.msra.mxu0 %v339_v13  ;;  %370 = vmatpush3.bf16.msra.mxu1 %v339_v13 }
  0x36   :  { %344 = vmatprep.subr.bf16.mxu0 %v343_v16  ;;  %363 = vmatprep.subr.bf16.mxu1 %v343_v16 }
  0x39   :  { %346 = vmatpush3.bf16.msra.mxu0 %v343_v16  ;;  %371 = vmatpush3.bf16.msra.mxu1 %v343_v16 }
  0x3a   :  { %348 = vmatprep.subr.bf16.mxu0 %v347_v19  ;;  %364 = vmatprep.subr.bf16.mxu1 %v347_v19 }
  0x3d   :  { %350 = vmatpush3.bf16.msra.mxu0 %v347_v19  ;;  %372 = vmatpush3.bf16.msra.mxu1 %v347_v19 }
  0x3e   :  { %352 = vmatprep.subr.bf16.mxu0 %v351_v22  ;;  %365 = vmatprep.subr.bf16.mxu1 %v351_v22 }
  0x41   :  { %354 = vmatpush3.bf16.msra.mxu0 %v351_v22  ;;  %373 = vmatpush3.bf16.msra.mxu1 %v351_v22 }
  0x42   :  { %356 = vmatprep.subr.bf16.mxu0 %v355_v25  ;;  %366 = vmatprep.subr.bf16.mxu1 %v355_v25 }
  0x45   :  { %358 = vmatpush3.bf16.msra.mxu0 %v355_v25  ;;  %374 = vmatpush3.bf16.msra.mxu1 %v355_v25 }
  0x48   :  { %304 = vmatmul.mubr.f32.vlgmr.msra.gmra.mrb[0].mxu0 %v40_v26  ;;  %316 = vmatmul.mubr.f32.vlgmr.msra.gmra.mrb[0].mxu1 %v48_v27 }
  0x49   :  { %306 = vmatprep.mubr.f32.mxu0 %v41_v28  ;;  %318 = vmatprep.mubr.f32.mxu1 %v49_v29 }
  0x4c   :  { %307 = vmatmul.mubr.f32.gmra.mrb[2].mxu0 %v42_v30  ;;  %319 = vmatmul.mubr.f32.gmra.mrb[2].mxu1 %v50_v31 }
  0x4d   :  { %309 = vmatprep.mubr.f32.mxu0 %v43_v32  ;;  %321 = vmatprep.mubr.f32.mxu1 %v51_v33 }
  0x50   :  { %310 = vmatmul.mubr.f32.gmra.mrb[4].mxu0 %v44_v34  ;;  %322 = vmatmul.mubr.f32.gmra.mrb[4].mxu1 %v52_v35 }
  0x51   :  { %312 = vmatprep.mubr.f32.mxu0 %v45_v36  ;;  %324 = vmatprep.mubr.f32.mxu1 %v53_v37 }
  0x54   :  { %313 = vmatmul.mubr.f32.gmra.mrb[6].mxu0 %v46_v38  ;;  %325 = vmatmul.mubr.f32.gmra.mrb[6].mxu1 %v54_v39 }
 0x11b   :  { %v305_v40 = vpop.f32.mrb[0].mxu0  ;;  %v317_v41 = vpop.f32.mrb[0].mxu1 }
 0x11c   :  { %218 = vst.msk [vmem:[%s536_s2 + $0x8] sm:$0xff] %vm216_vm0, %v305_v40  ;;  %226 = vst.msk [vmem:[%s536_s2 + $0x48] sm:$0xff] %vm216_vm0, %v317_v41  ;;  %v137_v42 = vpop.f32.mrb[1].mxu0  ;;  %v177_v43 = vpop.f32.mrb[1].mxu1 }
 0x11d   :  { %217 = vst.msk [vmem:[%s536_s2] sm:$0xff] %vm216_vm0, %v137_v42  ;;  %225 = vst.msk [vmem:[%s536_s2 + $0x40] sm:$0xff] %vm216_vm0, %v177_v43 }
 0x11f   :  { %v308_v44 = vpop.f32.mrb[2].mxu0  ;;  %v320_v45 = vpop.f32.mrb[2].mxu1 }
 0x120   :  { %220 = vst.msk [vmem:[%s536_s2 + $0x18] sm:$0xff] %vm216_vm0, %v308_v44  ;;  %228 = vst.msk [vmem:[%s536_s2 + $0x58] sm:$0xff] %vm216_vm0, %v320_v45  ;;  %v147_v46 = vpop.f32.mrb[3].mxu0  ;;  %v187_v47 = vpop.f32.mrb[3].mxu1 }
 0x121   :  { %219 = vst.msk [vmem:[%s536_s2 + $0x10] sm:$0xff] %vm216_vm0, %v147_v46  ;;  %227 = vst.msk [vmem:[%s536_s2 + $0x50] sm:$0xff] %vm216_vm0, %v187_v47 }
 0x123   :  { %v311_v48 = vpop.f32.mrb[4].mxu0  ;;  %v323_v49 = vpop.f32.mrb[4].mxu1 }
 0x124   :  { %222 = vst.msk [vmem:[%s536_s2 + $0x28] sm:$0xff] %vm216_vm0, %v311_v48  ;;  %230 = vst.msk [vmem:[%s536_s2 + $0x68] sm:$0xff] %vm216_vm0, %v323_v49  ;;  %v157_v50 = vpop.f32.mrb[5].mxu0  ;;  %v197_v51 = vpop.f32.mrb[5].mxu1 }
 0x125   :  { %221 = vst.msk [vmem:[%s536_s2 + $0x20] sm:$0xff] %vm216_vm0, %v157_v50  ;;  %229 = vst.msk [vmem:[%s536_s2 + $0x60] sm:$0xff] %vm216_vm0, %v197_v51 }
 0x127   :  { %v314_v52 = vpop.f32.mrb[6].mxu0  ;;  %v326_v53 = vpop.f32.mrb[6].mxu1 }
 0x128   :  { %224 = vst.msk [vmem:[%s536_s2 + $0x38] sm:$0xff] %vm216_vm0, %v314_v52  ;;  %232 = vst.msk [vmem:[%s536_s2 + $0x78] sm:$0xff] %vm216_vm0, %v326_v53  ;;  %v167_v54 = vpop.f32.mrb[7].mxu0  ;;  %v207_v55 = vpop.f32.mrb[7].mxu1 }
 0x129   :  { %223 = vst.msk [vmem:[%s536_s2 + $0x30] sm:$0xff] %vm216_vm0, %v167_v54  ;;  %231 = vst.msk [vmem:[%s536_s2 + $0x70] sm:$0xff] %vm216_vm0, %v207_v55 }
 0x12a   :  { %237 = vsyncpa [#allocation3], 1 }
 0x12b   :  { %238 = vsyncpa [#allocation5], 1 }

</bundles_post_ra>
